<compile_context>
chip_gen: v7x
topology: tpu7x:2x2x1
jax: 0.10.0
libtpu: 0.0.40
codegen_flags: <defaults>
</compile_context>

<pallas_src>
import functools

import jax
import jax.numpy as jnp
import numpy as np
from jax import lax
from jax.experimental import pallas as pl
from jax.experimental.pallas import tpu as pltpu


def _prenorm_attention_kernel(
    x_ref, g_ref, b_ref, wqkv_ref, wo_ref,   # inputs
    o_ref,                                   # output
    *, heads, dim_head, eps, compute_dtype,
):
    inner = heads * dim_head

    # ---- LayerNorm in f32 -----------------------------------------------------
    x = x_ref[0].astype(jnp.float32)                       # (N, D)
    mu = jnp.mean(x, axis=-1, keepdims=True)
    xc = x - mu
    var = jnp.mean(xc * xc, axis=-1, keepdims=True)
    inv = lax.rsqrt(var + eps)
    xn = (xc * inv * g_ref[...] + b_ref[...]).astype(compute_dtype)   # (N, D) bf16

    # ---- fused QKV projection: one lane-dense MXU matmul ----------------------
    # softmax scale is pre-folded into the q columns of wqkv on the host.
    qkv = jnp.dot(xn, wqkv_ref[...],
                  preferred_element_type=jnp.float32)      # (N, 3*inner) f32

    # ---- per-head softmax attention over static column slices -----------------
    head_outs = []
    for h in range(heads):                                  # small, unrolls
        lo = h * dim_head
        q = qkv[:, lo:lo + dim_head].astype(compute_dtype)               # (N, dh)
        k = qkv[:, inner + lo:inner + lo + dim_head].astype(compute_dtype)
        v = qkv[:, 2 * inner + lo:2 * inner + lo + dim_head].astype(compute_dtype)

        # q @ k^T without materializing a transpose: contract last dims.
        dots = lax.dot_general(q, k, (((1,), (1,)), ((), ())),
                               preferred_element_type=jnp.float32)       # (N, N)
        dots = dots - jnp.max(dots, axis=-1, keepdims=True)
        p = jnp.exp(dots)                                   # softmax in f32
        attn = p * pl.reciprocal(jnp.sum(p, axis=-1, keepdims=True), approx=True)

        head_outs.append(jnp.dot(attn.astype(compute_dtype), v,
                                 preferred_element_type=jnp.float32))    # (N, dh)

    # ---- single fused output projection ---------------------------------------
    oh = jnp.concatenate(head_outs, axis=-1).astype(compute_dtype)       # (N, inner)
    o_ref[0] = jnp.dot(oh, wo_ref[...],
                       preferred_element_type=jnp.float32).astype(o_ref.dtype)


def prenorm_attention_pallas(
    x, gamma, beta, w_qkv, w_out, *, heads, dim_head,
    eps=1e-5, compute_dtype=jnp.bfloat16,
):
    """PreNorm(dim, Attention(dim, heads, dim_head)) forward.

    x     : (B, N, D)
    gamma : (D,)  LayerNorm weight        beta : (D,)  LayerNorm bias
    w_qkv : (3*heads*dim_head, D)   Conv2d(dim, inner*3, 1, bias=False).weight
    w_out : (D, heads*dim_head)     Conv2d(inner, dim, 1, bias=False).weight
    """
    B, N, D = x.shape
    inner = heads * dim_head
    assert w_qkv.shape == (3 * inner, D)
    assert w_out.shape == (D, inner)
    scale = float(dim_head) ** -0.5

    # ---- one-time host-side layout plumbing ------------------------------------
    # dense equivalent of the 1x1 conv: y = xn @ w_qkv.T  -> (D, 3*inner) slab.
    wqkv_t = jnp.asarray(w_qkv, jnp.float32).T              # (D, 3*inner)
    # fold the softmax scale into the q columns (first `inner` output channels).
    col_scale = jnp.concatenate(
        [jnp.full((inner,), scale, jnp.float32), jnp.ones((2 * inner,), jnp.float32)])
    wqkv_t = (wqkv_t * col_scale[None, :]).astype(compute_dtype)
    wo_t = jnp.asarray(w_out, jnp.float32).T.astype(compute_dtype)   # (inner, D)

    g2 = gamma.reshape(1, D).astype(jnp.float32)
    b2 = beta.reshape(1, D).astype(jnp.float32)

    kernel = functools.partial(
        _prenorm_attention_kernel,
        heads=heads, dim_head=dim_head, eps=eps, compute_dtype=compute_dtype)

    # Advisory cost estimate so XLA schedules surrounding ops correctly.
    wbytes = jnp.dtype(compute_dtype).itemsize
    flops = B * (2 * N * D * 3 * inner                 # fused QKV projection
                 + 4 * heads * N * N * dim_head        # q@k^T and attn@v
                 + 2 * N * inner * D)                  # output projection
    cost = pl.CostEstimate(
        flops=int(flops),
        transcendentals=int(B * (heads * N * N + N)),  # softmax exp + rsqrt
        bytes_accessed=int(2 * B * N * D * x.dtype.itemsize   # x in, out
                           + 2 * D * 4                         # gamma, beta
                           + 4 * D * inner * wbytes),          # weights (once)
    )

    return pl.pallas_call(
        kernel,
        out_shape=jax.ShapeDtypeStruct((B, N, D), x.dtype),
        grid_spec=pltpu.PrefetchScalarGridSpec(
            num_scalar_prefetch=0,
            grid=(B,),
            in_specs=[
                pl.BlockSpec((1, N, D), lambda b: (b, 0, 0)),          # x
                pl.BlockSpec((1, D), lambda b: (0, 0)),                # gamma
                pl.BlockSpec((1, D), lambda b: (0, 0)),                # beta
                pl.BlockSpec((D, 3 * inner), lambda b: (0, 0)),        # wqkv (resident)
                pl.BlockSpec((inner, D), lambda b: (0, 0)),            # wout (resident)
            ],
            out_specs=pl.BlockSpec((1, N, D), lambda b: (b, 0, 0)),
        ),
        compiler_params=pltpu.CompilerParams(
            dimension_semantics=("parallel",),
            vmem_limit_bytes=48 * 1024 * 1024,
        ),
        cost_estimate=cost,
    )(x, g2, b2, wqkv_t, wo_t)


def prenorm_attention_ref(x, gamma, beta, w_qkv, w_out, *, heads, dim_head, eps=1e-5):
    """Pure-JAX f32 reference matching the PyTorch forward pass."""
    b, n, d = x.shape
    inner = heads * dim_head
    scale = float(dim_head) ** -0.5

    mu = jnp.mean(x, axis=-1, keepdims=True)
    var = jnp.mean((x - mu) ** 2, axis=-1, keepdims=True)
    xn = (x - mu) / jnp.sqrt(var + eps) * gamma + beta

    qkv = jnp.einsum("bnd,od->bno", xn, w_qkv)               # (b, n, 3*inner)
    q, k, v = jnp.split(qkv, 3, axis=-1)

    def split_heads(t):
        return t.reshape(b, n, heads, dim_head).transpose(0, 2, 1, 3)

    q, k, v = split_heads(q), split_heads(k), split_heads(v)
    dots = jnp.einsum("bhnd,bhmd->bhnm", q, k) * scale
    attn = jax.nn.softmax(dots, axis=-1)
    out = jnp.einsum("bhnm,bhmd->bhnd", attn, v)
    out = out.transpose(0, 2, 1, 3).reshape(b, n, inner)
    return jnp.einsum("bni,di->bnd", out, w_out)


if __name__ == "__main__":
    B, N, DIM = 2, 8, 32
    HEADS, DIM_HEAD = 4, 8
    INNER = HEADS * DIM_HEAD

    key = jax.random.PRNGKey(0)
    kx, kg, kb, kqkv, kout = jax.random.split(key, 5)

    x = jax.random.normal(kx, (B, N, DIM), dtype=jnp.float32)
    gamma = 1.0 + 0.1 * jax.random.normal(kg, (DIM,), dtype=jnp.float32)
    beta = 0.1 * jax.random.normal(kb, (DIM,), dtype=jnp.float32)
    # Conv2d(dim, inner*3, 1, bias=False).weight -> (inner*3, dim)
    w_qkv = jax.random.normal(kqkv, (3 * INNER, DIM), dtype=jnp.float32) * 0.1
    # Conv2d(inner, dim, 1, bias=False).weight -> (dim, inner)
    w_out = jax.random.normal(kout, (DIM, INNER), dtype=jnp.float32) * 0.1

    out = prenorm_attention_pallas(x, gamma, beta, w_qkv, w_out,
                                   heads=HEADS, dim_head=DIM_HEAD)
    out = jax.block_until_ready(out)

    ref = prenorm_attention_ref(x, gamma, beta, w_qkv, w_out,
                                heads=HEADS, dim_head=DIM_HEAD)
    # bf16 MXU operands + approx EUP reciprocal vs f32 reference -> relaxed tol.
    np.testing.assert_allclose(np.asarray(out), np.asarray(ref), rtol=2e-2, atol=2e-2)

    print("KERNEL_OK")
</pallas_src>

<mosaic_0001>
module attributes {stable_mosaic.version = 11 : i64} {
  func.func @_prenorm_attention_kernel(%arg0: i32, %arg1: memref<1x8x32xf32, #tpu.memory_space<vmem>>, %arg2: memref<1x32xf32, #tpu.memory_space<vmem>>, %arg3: memref<1x32xf32, #tpu.memory_space<vmem>>, %arg4: memref<32x96xbf16, #tpu.memory_space<vmem>>, %arg5: memref<32x32xbf16, #tpu.memory_space<vmem>>, %arg6: memref<1x8x32xf32, #tpu.memory_space<vmem>>) attributes {dimension_semantics = [#tpu.dimension_semantics<parallel>], iteration_bounds = array<i64: 2>, scalar_prefetch = 0 : i64, scratch_operands = 0 : i64, tpu.core_type = #tpu.core_type<tc>, window_params = [{transform_indices = @transform_0, window_bounds = array<i64: 1, 8, 32>}, {pipeline_mode = #tpu.pipeline_mode<synchronous>, transform_indices = @transform_1, window_bounds = array<i64: 1, 32>}, {pipeline_mode = #tpu.pipeline_mode<synchronous>, transform_indices = @transform_2, window_bounds = array<i64: 1, 32>}, {pipeline_mode = #tpu.pipeline_mode<synchronous>, transform_indices = @transform_3, window_bounds = array<i64: 32, 96>}, {pipeline_mode = #tpu.pipeline_mode<synchronous>, transform_indices = @transform_4, window_bounds = array<i64: 32, 32>}, {transform_indices = @transform_5, window_bounds = array<i64: 1, 8, 32>}]} {
    %c0 = arith.constant 0 : index
    %c0_0 = arith.constant 0 : index
    %c0_1 = arith.constant 0 : index
    %0 = vector.load %arg1[%c0, %c0_0, %c0_1] : memref<1x8x32xf32, #tpu.memory_space<vmem>>, vector<1x8x32xf32>
    %1 = vector.shape_cast %0 : vector<1x8x32xf32> to vector<8x32xf32>
    %cst = arith.constant dense<0.000000e+00> : vector<8xf32>
    %2 = vector.multi_reduction <add>, %1, %cst [1] : vector<8x32xf32> to vector<8xf32>
    %3 = vector.shape_cast %2 : vector<8xf32> to vector<8x1xf32>
    %cst_2 = arith.constant 3.200000e+01 : f32
    %4 = vector.broadcast %cst_2 : f32 to vector<8x1xf32>
    %5 = arith.divf %3, %4 : vector<8x1xf32>
    %6 = vector.broadcast %5 : vector<8x1xf32> to vector<8x32xf32>
    %7 = arith.subf %1, %6 : vector<8x32xf32>
    %8 = arith.mulf %7, %7 : vector<8x32xf32>
    %cst_3 = arith.constant dense<0.000000e+00> : vector<8xf32>
    %9 = vector.multi_reduction <add>, %8, %cst_3 [1] : vector<8x32xf32> to vector<8xf32>
    %10 = vector.shape_cast %9 : vector<8xf32> to vector<8x1xf32>
    %cst_4 = arith.constant 3.200000e+01 : f32
    %11 = vector.broadcast %cst_4 : f32 to vector<8x1xf32>
    %12 = arith.divf %10, %11 : vector<8x1xf32>
    %cst_5 = arith.constant 9.99999974E-6 : f32
    %13 = vector.broadcast %cst_5 : f32 to vector<8x1xf32>
    %14 = arith.addf %12, %13 : vector<8x1xf32>
    %15 = math.rsqrt %14 : vector<8x1xf32>
    %16 = vector.broadcast %15 : vector<8x1xf32> to vector<8x32xf32>
    %17 = arith.mulf %7, %16 : vector<8x32xf32>
    %c0_6 = arith.constant 0 : index
    %c0_7 = arith.constant 0 : index
    %18 = vector.load %arg2[%c0_6, %c0_7] : memref<1x32xf32, #tpu.memory_space<vmem>>, vector<1x32xf32>
    %19 = vector.broadcast %18 : vector<1x32xf32> to vector<8x32xf32>
    %20 = arith.mulf %17, %19 : vector<8x32xf32>
    %c0_8 = arith.constant 0 : index
    %c0_9 = arith.constant 0 : index
    %21 = vector.load %arg3[%c0_8, %c0_9] : memref<1x32xf32, #tpu.memory_space<vmem>>, vector<1x32xf32>
    %22 = vector.broadcast %21 : vector<1x32xf32> to vector<8x32xf32>
    %23 = arith.addf %20, %22 : vector<8x32xf32>
    %24 = arith.truncf %23 : vector<8x32xf32> to vector<8x32xbf16>
    %c0_10 = arith.constant 0 : index
    %c0_11 = arith.constant 0 : index
    %25 = vector.load %arg4[%c0_10, %c0_11] : memref<32x96xbf16, #tpu.memory_space<vmem>>, vector<32x96xbf16>
    %cst_12 = arith.constant dense<0.000000e+00> : vector<8x96xf32>
    %26 = tpu.matmul %24, %25, %cst_12 {dimension_numbers = #tpu.dot_dimension_numbers<[1], [0], [0], [1], [0, 0, 1, 1], [], []>} : vector<8x32xbf16>, vector<32x96xbf16>, vector<8x96xf32> -> vector<8x96xf32>
    %27 = vector.extract_strided_slice %26 {offsets = [0, 0], sizes = [8, 8], strides = [1, 1]} : vector<8x96xf32> to vector<8x8xf32>
    %28 = arith.truncf %27 : vector<8x8xf32> to vector<8x8xbf16>
    %29 = vector.extract_strided_slice %26 {offsets = [0, 32], sizes = [8, 8], strides = [1, 1]} : vector<8x96xf32> to vector<8x8xf32>
    %30 = arith.truncf %29 : vector<8x8xf32> to vector<8x8xbf16>
    %31 = vector.extract_strided_slice %26 {offsets = [0, 64], sizes = [8, 8], strides = [1, 1]} : vector<8x96xf32> to vector<8x8xf32>
    %32 = arith.truncf %31 : vector<8x8xf32> to vector<8x8xbf16>
    %cst_13 = arith.constant dense<0.000000e+00> : vector<8x8xf32>
    %33 = tpu.matmul %28, %30, %cst_13 {dimension_numbers = #tpu.dot_dimension_numbers<[1], [1], [0], [0], [0, 0, 1, 0], [], []>} : vector<8x8xbf16>, vector<8x8xbf16>, vector<8x8xf32> -> vector<8x8xf32>
    %cst_14 = arith.constant dense<0xFF800000> : vector<8xf32>
    %34 = vector.multi_reduction <maximumf>, %33, %cst_14 [1] : vector<8x8xf32> to vector<8xf32>
    %35 = vector.shape_cast %34 : vector<8xf32> to vector<8x1xf32>
    %36 = vector.broadcast %35 : vector<8x1xf32> to vector<8x8xf32>
    %37 = arith.subf %33, %36 : vector<8x8xf32>
    %38 = math.exp %37 : vector<8x8xf32>
    %cst_15 = arith.constant dense<0.000000e+00> : vector<8xf32>
    %39 = vector.multi_reduction <add>, %38, %cst_15 [1] : vector<8x8xf32> to vector<8xf32>
    %40 = vector.shape_cast %39 : vector<8xf32> to vector<8x1xf32>
    %41 = tpu.reciprocal %40 {approx = true} : vector<8x1xf32> -> vector<8x1xf32>
    %42 = vector.broadcast %41 : vector<8x1xf32> to vector<8x8xf32>
    %43 = arith.mulf %38, %42 : vector<8x8xf32>
    %44 = arith.truncf %43 : vector<8x8xf32> to vector<8x8xbf16>
    %cst_16 = arith.constant dense<0.000000e+00> : vector<8x8xf32>
    %45 = tpu.matmul %44, %32, %cst_16 {dimension_numbers = #tpu.dot_dimension_numbers<[1], [0], [0], [1], [0, 0, 1, 1], [], []>} : vector<8x8xbf16>, vector<8x8xbf16>, vector<8x8xf32> -> vector<8x8xf32>
    %46 = vector.extract_strided_slice %26 {offsets = [0, 8], sizes = [8, 8], strides = [1, 1]} : vector<8x96xf32> to vector<8x8xf32>
    %47 = arith.truncf %46 : vector<8x8xf32> to vector<8x8xbf16>
    %48 = vector.extract_strided_slice %26 {offsets = [0, 40], sizes = [8, 8], strides = [1, 1]} : vector<8x96xf32> to vector<8x8xf32>
    %49 = arith.truncf %48 : vector<8x8xf32> to vector<8x8xbf16>
    %50 = vector.extract_strided_slice %26 {offsets = [0, 72], sizes = [8, 8], strides = [1, 1]} : vector<8x96xf32> to vector<8x8xf32>
    %51 = arith.truncf %50 : vector<8x8xf32> to vector<8x8xbf16>
    %cst_17 = arith.constant dense<0.000000e+00> : vector<8x8xf32>
    %52 = tpu.matmul %47, %49, %cst_17 {dimension_numbers = #tpu.dot_dimension_numbers<[1], [1], [0], [0], [0, 0, 1, 0], [], []>} : vector<8x8xbf16>, vector<8x8xbf16>, vector<8x8xf32> -> vector<8x8xf32>
    %cst_18 = arith.constant dense<0xFF800000> : vector<8xf32>
    %53 = vector.multi_reduction <maximumf>, %52, %cst_18 [1] : vector<8x8xf32> to vector<8xf32>
    %54 = vector.shape_cast %53 : vector<8xf32> to vector<8x1xf32>
    %55 = vector.broadcast %54 : vector<8x1xf32> to vector<8x8xf32>
    %56 = arith.subf %52, %55 : vector<8x8xf32>
    %57 = math.exp %56 : vector<8x8xf32>
    %cst_19 = arith.constant dense<0.000000e+00> : vector<8xf32>
    %58 = vector.multi_reduction <add>, %57, %cst_19 [1] : vector<8x8xf32> to vector<8xf32>
    %59 = vector.shape_cast %58 : vector<8xf32> to vector<8x1xf32>
    %60 = tpu.reciprocal %59 {approx = true} : vector<8x1xf32> -> vector<8x1xf32>
    %61 = vector.broadcast %60 : vector<8x1xf32> to vector<8x8xf32>
    %62 = arith.mulf %57, %61 : vector<8x8xf32>
    %63 = arith.truncf %62 : vector<8x8xf32> to vector<8x8xbf16>
    %cst_20 = arith.constant dense<0.000000e+00> : vector<8x8xf32>
    %64 = tpu.matmul %63, %51, %cst_20 {dimension_numbers = #tpu.dot_dimension_numbers<[1], [0], [0], [1], [0, 0, 1, 1], [], []>} : vector<8x8xbf16>, vector<8x8xbf16>, vector<8x8xf32> -> vector<8x8xf32>
    %65 = vector.extract_strided_slice %26 {offsets = [0, 16], sizes = [8, 8], strides = [1, 1]} : vector<8x96xf32> to vector<8x8xf32>
    %66 = arith.truncf %65 : vector<8x8xf32> to vector<8x8xbf16>
    %67 = vector.extract_strided_slice %26 {offsets = [0, 48], sizes = [8, 8], strides = [1, 1]} : vector<8x96xf32> to vector<8x8xf32>
    %68 = arith.truncf %67 : vector<8x8xf32> to vector<8x8xbf16>
    %69 = vector.extract_strided_slice %26 {offsets = [0, 80], sizes = [8, 8], strides = [1, 1]} : vector<8x96xf32> to vector<8x8xf32>
    %70 = arith.truncf %69 : vector<8x8xf32> to vector<8x8xbf16>
    %cst_21 = arith.constant dense<0.000000e+00> : vector<8x8xf32>
    %71 = tpu.matmul %66, %68, %cst_21 {dimension_numbers = #tpu.dot_dimension_numbers<[1], [1], [0], [0], [0, 0, 1, 0], [], []>} : vector<8x8xbf16>, vector<8x8xbf16>, vector<8x8xf32> -> vector<8x8xf32>
    %cst_22 = arith.constant dense<0xFF800000> : vector<8xf32>
    %72 = vector.multi_reduction <maximumf>, %71, %cst_22 [1] : vector<8x8xf32> to vector<8xf32>
    %73 = vector.shape_cast %72 : vector<8xf32> to vector<8x1xf32>
    %74 = vector.broadcast %73 : vector<8x1xf32> to vector<8x8xf32>
    %75 = arith.subf %71, %74 : vector<8x8xf32>
    %76 = math.exp %75 : vector<8x8xf32>
    %cst_23 = arith.constant dense<0.000000e+00> : vector<8xf32>
    %77 = vector.multi_reduction <add>, %76, %cst_23 [1] : vector<8x8xf32> to vector<8xf32>
    %78 = vector.shape_cast %77 : vector<8xf32> to vector<8x1xf32>
    %79 = tpu.reciprocal %78 {approx = true} : vector<8x1xf32> -> vector<8x1xf32>
    %80 = vector.broadcast %79 : vector<8x1xf32> to vector<8x8xf32>
    %81 = arith.mulf %76, %80 : vector<8x8xf32>
    %82 = arith.truncf %81 : vector<8x8xf32> to vector<8x8xbf16>
    %cst_24 = arith.constant dense<0.000000e+00> : vector<8x8xf32>
    %83 = tpu.matmul %82, %70, %cst_24 {dimension_numbers = #tpu.dot_dimension_numbers<[1], [0], [0], [1], [0, 0, 1, 1], [], []>} : vector<8x8xbf16>, vector<8x8xbf16>, vector<8x8xf32> -> vector<8x8xf32>
    %84 = vector.extract_strided_slice %26 {offsets = [0, 24], sizes = [8, 8], strides = [1, 1]} : vector<8x96xf32> to vector<8x8xf32>
    %85 = arith.truncf %84 : vector<8x8xf32> to vector<8x8xbf16>
    %86 = vector.extract_strided_slice %26 {offsets = [0, 56], sizes = [8, 8], strides = [1, 1]} : vector<8x96xf32> to vector<8x8xf32>
    %87 = arith.truncf %86 : vector<8x8xf32> to vector<8x8xbf16>
    %88 = vector.extract_strided_slice %26 {offsets = [0, 88], sizes = [8, 8], strides = [1, 1]} : vector<8x96xf32> to vector<8x8xf32>
    %89 = arith.truncf %88 : vector<8x8xf32> to vector<8x8xbf16>
    %cst_25 = arith.constant dense<0.000000e+00> : vector<8x8xf32>
    %90 = tpu.matmul %85, %87, %cst_25 {dimension_numbers = #tpu.dot_dimension_numbers<[1], [1], [0], [0], [0, 0, 1, 0], [], []>} : vector<8x8xbf16>, vector<8x8xbf16>, vector<8x8xf32> -> vector<8x8xf32>
    %cst_26 = arith.constant dense<0xFF800000> : vector<8xf32>
    %91 = vector.multi_reduction <maximumf>, %90, %cst_26 [1] : vector<8x8xf32> to vector<8xf32>
    %92 = vector.shape_cast %91 : vector<8xf32> to vector<8x1xf32>
    %93 = vector.broadcast %92 : vector<8x1xf32> to vector<8x8xf32>
    %94 = arith.subf %90, %93 : vector<8x8xf32>
    %95 = math.exp %94 : vector<8x8xf32>
    %cst_27 = arith.constant dense<0.000000e+00> : vector<8xf32>
    %96 = vector.multi_reduction <add>, %95, %cst_27 [1] : vector<8x8xf32> to vector<8xf32>
    %97 = vector.shape_cast %96 : vector<8xf32> to vector<8x1xf32>
    %98 = tpu.reciprocal %97 {approx = true} : vector<8x1xf32> -> vector<8x1xf32>
    %99 = vector.broadcast %98 : vector<8x1xf32> to vector<8x8xf32>
    %100 = arith.mulf %95, %99 : vector<8x8xf32>
    %101 = arith.truncf %100 : vector<8x8xf32> to vector<8x8xbf16>
    %cst_28 = arith.constant dense<0.000000e+00> : vector<8x8xf32>
    %102 = tpu.matmul %101, %89, %cst_28 {dimension_numbers = #tpu.dot_dimension_numbers<[1], [0], [0], [1], [0, 0, 1, 1], [], []>} : vector<8x8xbf16>, vector<8x8xbf16>, vector<8x8xf32> -> vector<8x8xf32>
    %103 = tpu.concatenate %45, %64, %83, %102 in 1 : vector<8x8xf32>, vector<8x8xf32>, vector<8x8xf32>, vector<8x8xf32> -> vector<8x32xf32>
    %104 = arith.truncf %103 : vector<8x32xf32> to vector<8x32xbf16>
    %c0_29 = arith.constant 0 : index
    %c0_30 = arith.constant 0 : index
    %105 = vector.load %arg5[%c0_29, %c0_30] : memref<32x32xbf16, #tpu.memory_space<vmem>>, vector<32x32xbf16>
    %cst_31 = arith.constant dense<0.000000e+00> : vector<8x32xf32>
    %106 = tpu.matmul %104, %105, %cst_31 {dimension_numbers = #tpu.dot_dimension_numbers<[1], [0], [0], [1], [0, 0, 1, 1], [], []>} : vector<8x32xbf16>, vector<32x32xbf16>, vector<8x32xf32> -> vector<8x32xf32>
    %c0_32 = arith.constant 0 : index
    %c0_33 = arith.constant 0 : index
    %c0_34 = arith.constant 0 : index
    %107 = vector.load %arg6[%c0_32, %c0_33, %c0_34] : memref<1x8x32xf32, #tpu.memory_space<vmem>>, vector<1x8x32xf32>
    %108 = vector.shape_cast %107 : vector<1x8x32xf32> to vector<8x32xf32>
    %109 = vector.shape_cast %106 : vector<8x32xf32> to vector<1x8x32xf32>
    tpu.vector_store %arg6[%c0_32, %c0_33, %c0_34], %109 {strides = array<i32>} : memref<1x8x32xf32, #tpu.memory_space<vmem>>, vector<1x8x32xf32>,
    return
  }
  func.func @transform_0(%arg0: i32) -> (i32, i32, i32) {
    %c0_i32 = arith.constant 0 : i32
    %c0_i32_0 = arith.constant 0 : i32
    %c0_i32_1 = arith.constant 0 : i32
    return %arg0, %c0_i32, %c0_i32_0 : i32, i32, i32
  }
  func.func @transform_1(%arg0: i32) -> (i32, i32) {
    %c0_i32 = arith.constant 0 : i32
    %c0_i32_0 = arith.constant 0 : i32
    %c0_i32_1 = arith.constant 0 : i32
    return %c0_i32, %c0_i32_0 : i32, i32
  }
  func.func @transform_2(%arg0: i32) -> (i32, i32) {
    %c0_i32 = arith.constant 0 : i32
    %c0_i32_0 = arith.constant 0 : i32
    %c0_i32_1 = arith.constant 0 : i32
    return %c0_i32, %c0_i32_0 : i32, i32
  }
  func.func @transform_3(%arg0: i32) -> (i32, i32) {
    %c0_i32 = arith.constant 0 : i32
    %c0_i32_0 = arith.constant 0 : i32
    %c0_i32_1 = arith.constant 0 : i32
    return %c0_i32, %c0_i32_0 : i32, i32
  }
  func.func @transform_4(%arg0: i32) -> (i32, i32) {
    %c0_i32 = arith.constant 0 : i32
    %c0_i32_0 = arith.constant 0 : i32
    %c0_i32_1 = arith.constant 0 : i32
    return %c0_i32, %c0_i32_0 : i32, i32
  }
  func.func @transform_5(%arg0: i32) -> (i32, i32, i32) {
    %c0_i32 = arith.constant 0 : i32
    %c0_i32_0 = arith.constant 0 : i32
    %c0_i32_1 = arith.constant 0 : i32
    return %arg0, %c0_i32, %c0_i32_0 : i32, i32, i32
  }
}

</mosaic_0001>

<bundles_post_ra>
// kernel: tpu_custom_call.1
= control target key start
LH: loop header
LB: loop body
LE: loop exit
PB: predicated region body
PF: predicated region fallthrough
CT: control target
= control target key end

     0   :  { %10 = vsyncpa [#allocation3], 0  ;;  %s1735_s0 = inlined_call_operand.hbm [shape: f32[2,8,32], index: 0, kind: input, shape index: {}]   ;;  %s1736_s1 = inlined_call_operand.vmem [shape: f32[1,32], index: 1, kind: input, shape index: {}]   ;;  %s1737_s2 = inlined_call_operand.vmem [shape: f32[1,32], index: 2, kind: input, shape index: {}]   ;;  %s1738_s3 = inlined_call_operand.hbm [shape: bf16[32,96], index: 3, kind: input, shape index: {}]   ;;  %s1739_s4 = inlined_call_operand.hbm [shape: bf16[32,32], index: 4, kind: input, shape index: {}]   ;;  %s1740_s5 = inlined_call_operand.hbm [shape: f32[2,8,32], index: 5, kind: output, shape index: {}]  }
   0x1   :  { %12 = vsyncpa [#allocation3 + $0x1], 0 }
   0x2   :  { %13 = vsyncpa [#allocation6], 0 }
   0x3   :  { %14 = vsyncpa [#allocation4], 0 }
   0x4   :  { %16 = vsyncpa [#allocation4 + $0x1], 0  ;;  %s1420_s18 = smov 0   ;;  %s1422_s19 = smov 0  }
   0x5   :  { %s1424_s20 = smov 0   ;;  %s1426_s21 = smov 0  }
   0x6 LB: > { %s1441_s22 = sadd.s32 4294967295, %s1366_s21   ;;  %s985_s23 = sadd.s32 4294967294, %s1366_s21   ;;  %s1366_s21 = sphi %s1426_s21, %s1760_s21   ;;  %s1362_s20 = sphi %s1424_s20, %s1759_s20   ;;  %s1358_s19 = sphi %s1422_s19, %s1758_s19   ;;  %s1354_s18 = sphi %s1420_s18, %s1757_s18  }
   0x7   : > { %p42_p0 = scmp.ne.s32.totalorder %s1358_s19, %s1354_s18  ;;  %p1741_p1 = scmp.eq.s32.totalorder %s1441_s22, 0 }
   0x8   : > { %p156_p3 = scmp.eq.s32.totalorder %s985_s23, 1  ;;  %p986_p5 = scmp.ge.s32.totalorder %s1366_s21, 1 }
   0x9   : > { %p1450_p4 = por %p1741_p1, %p42_p0  ;;  %p163_p7 = scmp.lt.s32.totalorder %s1366_s21, 3 }
   0xa   : > { %p1455_p6 = por %p156_p3, %p42_p0  ;;  %s1368_s27 = smov [#allocation5]  }
   0xb   : > { %s1744_s24 = scalar_select %p1450_p4, 1, 0 }
   0xc   : > { %s1745_s25 = scalar_select %p1455_p6, 1, 0 }
   0xd   : > { %p1460_p8 = pnand %p986_p5, %p163_p7  ;;  %s181_s28 = sshll.u32 %s1368_s27, 4  ;;  %s1464_s28 = int_to_ptr.vmem [resolvable:$true] %s181_s28 }
   0xe   : > { %s1369_s30 = smov [#allocation7]   ;;  %s1210_s9 = scalar_lea.hbm %s1738_s3, 256 }
   0xf   : > { %p1115_p9 = pneg %p1460_p8  ;;  %s194_s6 = sshll.u32 %s1369_s30, 4  ;;  %s1475_s6 = int_to_ptr.vmem [resolvable:$true] %s194_s6 }
  0x10   : > { %p1211_p12 = scmp.ne.s32.totalorder %s1738_s3, %s1210_s9  ;;  %p1217_p5 = scmp.lt.u32.totalorder %s1210_s9, %s1738_s3 }
  0x11   : > { %p1471_p11 = pnand %p1115_p9, %p1741_p1 }
  0x13   : > { %p1212_p13 = pneg %p1471_p11 }
  0x15   : > { %p1213_p0 = pnand %p1212_p13, %p1211_p12 }
  0x17   : > { %p1214_p3 = pneg %p1213_p0 }
  0x19   : > { %p1219_p7 = pnand %p1217_p5, %p1214_p3 }
  0x1b   : > { %1222 = shalt.err (!%p1219_p7)
}
  0x1c   : > { %s1223_s14 = scalar_lea.vmem %s1464_s28, 256  ;;  %p1231_p2 = scmp.lt.s32.totalorder %s1464_s28, %s1464_s28 }
  0x1d   : > { %p1224_p9 = scmp.ne.s32.totalorder %s1464_s28, %s1223_s14  ;;  %p1232_p12 = scmp.lt.s32.totalorder %s1223_s14, %s1223_s14 }
  0x1f   : > { %p1226_p10 = pnand %p1224_p9, %p1212_p13  ;;  %p1233_p0 = por %p1232_p12, %p1231_p2 }
  0x21   : > { %p1227_p1 = pneg %p1226_p10 }
  0x23   : > { %p1234_p6 = pnand %p1233_p0, %p1227_p1 }
  0x25   : > { %1237 = shalt.err (!%p1234_p6)
}
  0x26   : > { %s1370_s15 = smov 64   ;;  %s1371_s16 = smov 4  }
  0x27   : > { %1118 = dma.hbm_to_vmem [thread:$0]  (!%p1471_p11), %s1738_s3, 256, %s1464_s28, [#allocation6], %s1370_s15, %s1370_s15, %s1371_s16  }
  0x28   : > { %s1238_s7 = scalar_lea.hbm %s1739_s4, 256 }
  0x29   : > { %p1239_p2 = scmp.ne.s32.totalorder %s1739_s4, %s1238_s7  ;;  %p1245_p10 = scmp.lt.u32.totalorder %s1238_s7, %s1739_s4 }
  0x2b   : > { %p1241_p1 = pnand %p1239_p2, %p1212_p13 }
  0x2d   : > { %p1242_p6 = pneg %p1241_p1 }
  0x2f   : > { %p1247_p3 = pnand %p1245_p10, %p1242_p6 }
  0x31   : > { %1250 = shalt.err (!%p1247_p3)
}
  0x32   : > { %s1251_s28 = scalar_lea.vmem %s1475_s6, 256  ;;  %p1259_p12 = scmp.lt.s32.totalorder %s1475_s6, %s1475_s6 }
  0x33   : > { %p1252_p5 = scmp.ne.s32.totalorder %s1475_s6, %s1251_s28  ;;  %p1260_p0 = scmp.lt.s32.totalorder %s1251_s28, %s1251_s28 }
  0x35   : > { %p1254_p7 = pnand %p1252_p5, %p1212_p13  ;;  %p1261_p2 = por %p1260_p0, %p1259_p12 }
  0x37   : > { %p1255_p9 = pneg %p1254_p7 }
  0x39   : > { %p1262_p1 = pnand %p1261_p2, %p1255_p9 }
  0x3b   : > { %1265 = shalt.err (!%p1262_p1)
}
  0x3c   : > { %1121 = dma.hbm_to_vmem [thread:$0]  (!%p1471_p11), %s1739_s4, 256, %s1475_s6, [#allocation6], %s1370_s15, %s1370_s15, %s1371_s16  }
  0x3d   : > { %s1530_s14 = sadd.s32 1, %s1366_s21   ;;  %s29_s29 = sadd.s32 1, %s1362_s20 }
  0x3e   : > { %s26_s17 = ssub.s32 %s1366_s21, %s1530_s14  ;;  %p36_p13 = scmp.ne.s32.totalorder %s1362_s20, %s1358_s19 }
  0x3f   : > { %p27_p6 = scmp.eq.s32.totalorder %s26_s17, 0  ;;  %p37_p10 = scmp.eq.s32.totalorder %s1366_s21, 0 }
  0x40   : > { %p1748_p3 = scmp.eq.s32.totalorder %s1441_s22, 1  ;;  %p1132_p7 = scmp.lt.s32.totalorder %s1366_s21, 2 }
  0x41   : > { %s1546_s27 = scalar_select %p27_p6, %s1362_s20, %s29_s29  }
  0x42   : > { %p1540_p5 = por %p1748_p3, %p36_p13  ;;  %p38_p9 = por %p37_p10, %p36_p13 }
  0x43   : > { %s208_s30 = sand.u32 1, %s1362_s20   ;;  %s991_s6 = sshll.u32 %s1366_s21, 7 }
  0x44   : > { %s1749_s23 = scalar_select %p1540_p5, 1, 0 }
  0x45   : > { %s990_s7 = sshll.u32 %s208_s30, 3  ;;  %s1553_s8 = scalar_lea.hbm %s1735_s0, %s991_s6 }
  0x46   : > { %s212_s9 = scalar_lea.vmem [#allocation2], %s990_s7  ;;  %p1557_p11 = pnand %p1132_p7, %p38_p9 }
  0x47   : > { %s219_s10 = sshll.u32 %s212_s9, 4  ;;  %s209_s28 = scalar_lea.sflag [#allocation3], %s208_s30  ;;  %s1555_s10 = int_to_ptr.vmem [resolvable:$true] %s219_s10 }
  0x48   : > { %s1266_s12 = scalar_lea.hbm %s1553_s8, 128  ;;  %p1268_p0 = pneg %p1557_p11 }
  0x49   : > { %p1267_p12 = scmp.ne.s32.totalorder %s1553_s8, %s1266_s12  ;;  %s1271_s17 = scalar_lea.hbm %s1735_s0, 256 }
  0x4a   : > { %p1272_p13 = scmp.lt.u32.totalorder %s1553_s8, %s1735_s0  ;;  %p1273_p6 = scmp.lt.u32.totalorder %s1271_s17, %s1266_s12 }
  0x4b   : > { %p1269_p2 = pnand %p1268_p0, %p1267_p12  ;;  %p1275_p3 = scmp.lt.u32.totalorder %s1266_s12, %s1553_s8 }
  0x4c   : > { %p1274_p10 = por %p1273_p6, %p1272_p13 }
  0x4d   : > { %p1270_p1 = pneg %p1269_p2 }
  0x4e   : > { %p1276_p7 = por %p1275_p3, %p1274_p10 }
  0x50   : > { %p1277_p9 = pnand %p1276_p7, %p1270_p1 }
  0x52   : > { %1280 = shalt.err (!%p1277_p9)
}
  0x53   : > { %s1281_s30 = scalar_lea.vmem %s1555_s10, 128  ;;  %s1372_s15 = smov [#allocation2]  }
  0x54   : > { %p1282_p12 = scmp.ne.s32.totalorder %s1555_s10, %s1281_s30  ;;  %s1286_s16 = sshll.u32 %s1372_s15, 4  ;;  %s1287_s16 = int_to_ptr.vmem [resolvable:$false] %s1286_s16 }
  0x55   : > { %s1288_s9 = scalar_lea.vmem %s1287_s16, 256  ;;  %p1289_p4 = scmp.lt.s32.totalorder %s1555_s10, %s1287_s16 }
  0x56   : > { %p1284_p2 = pnand %p1282_p12, %p1268_p0  ;;  %p1290_p13 = scmp.lt.s32.totalorder %s1288_s9, %s1281_s30 }
  0x58   : > { %p1285_p5 = pneg %p1284_p2  ;;  %p1291_p6 = por %p1290_p13, %p1289_p4 }
  0x5a   : > { %p1292_p10 = pnand %p1291_p6, %p1285_p5 }
  0x5c   : > { %1295 = shalt.err (!%p1292_p10)
}
  0x5d   : > { %1125 = dma.hbm_to_vmem [thread:$0]  (!%p1557_p11), %s1553_s8, 128, %s1555_s10, %s209_s28  }
  0x5e   : > { %228 = sbr.rel (%p1460_p8) target bundleno = 1904 (0x770), region = 40  ;;  %s1589_s12 = sand.u32 (!%p1460_p8), 1, %s1358_s19  }
  0x5f   : > { %s993_s13 = sshll.u32 (!%p1460_p8), %s1589_s12, 3  ;;  %s231_s29 = scalar_lea.sflag (!%p1460_p8), [#allocation3], %s1589_s12 }
  0x60   : > { %s234_s17 = scalar_lea.vmem (!%p1460_p8), [#allocation2], %s993_s13  ;;  %p1751_p4 = scmp.ne.s32.totalorder (!%p1460_p8), %s1744_s24, 0 }
  0x65   : > { %1341 = dma.done.wait (%p1751_p4), %s231_s29, 128  }
  0x66   : > { %1343 = vsyncadd (%p1751_p4), %s231_s29, 4294967168  ;;  %p1752_p5 = scmp.eq.s32.totalorder %s1441_s22, 0 }
  0x68   : > { %1345 = dma.done.wait (%p1752_p5), [#allocation6], 512   ;;  %p1753_p8 = pmov %p1752_p5 }
  0x69   : > { %vm271_vm0 = vcmask 261120   ;;  %v270_v0 = vld [vmem:[%s234_s17] sm:$0xff]  ;;  %v1188_v7 = vld [vmem:[#allocation5] sm:$0xff]   ;;  %v1373_v8 = vmov 0.0   ;;  %vm1374_vm1 = vmmov 0   ;;  %v1189_v9 = vld [vmem:[#allocation5 + $0x8] sm:$0xff]  }
  0x6a   : > { %1347 = vsyncadd (%p1753_p8), [#allocation6], 4294966784  ;;  %v272_v1 = vsel %vm271_vm0, %v270_v0, 0.0  ;;  %1039 = vmatprep.subr.bf16.mxu0 %v1373_v8  ;;  %1043 = vmatprep.mubr.msk.bf16.mxu0 %vm1374_vm1, %v1373_v8  ;;  %v997_v14 = vld [vmem:[%s1736_s1] ss:$0 sm:$0xff]  ;;  %s1375_s11 = smov 120  }
  0x6b   : > { %273 = vadd.xlane.f32.xlu0 %v272_v1  ;;  %1040 = vmatpush3.bf16.msra.mxu0 %v1188_v7  ;;  %v998_v16 = vld [vmem:[%s1737_s2] ss:$0 sm:$0xff]  ;;  %s1376_s28 = smov 96   ;;  %s1377_s7 = smov 88   ;;  %vm366_vm2 = vcmask 64512   ;;  %vm430_vm3 = vcmask 1043456  }
  0x6c   : > { %1047 = vmatprep.subr.bf16.mxu1 %v1373_v8  ;;  %1041 = vmatprep.subr.bf16.mxu0 %v1373_v8  ;;  %s1378_s6 = smov 80   ;;  %s1379_s30 = smov 112   ;;  %vm817_vm4 = vcmask 130048   ;;  %vm819_vm5 = vcmask 195584  }
  0x6d   : > { %1049 = vmatprep.mubr.msk.bf16.mxu1 %vm1374_vm1, %v1373_v8  ;;  %s1380_s15 = smov 72   ;;  %s1381_s16 = smov 104  }
  0x6e   : > { %s1382_s9 = smov 64   ;;  %s1383_s29 = smov 56  }
  0x6f   : > { %1042 = vmatpush3.bf16.msra.mxu0 %v1189_v9  ;;  %s1384_s17 = smov 48   ;;  %s1385_s24 = smov 40  }
  0x70   : > { %1053 = vmatprep.subr.bf16.mxu0 %v1373_v8  ;;  %s1386_s26 = smov 8   ;;  %s1387_s8 = smov 16  }
  0x71   : > { %s1388_s10 = smov 24   ;;  %p1754_p0 = scmp.ne.s32.totalorder %s1749_s23, 0 }
  0xf8   : > { %v274_v2 = vpop.xlane.xlu0 %273 }
  0xf9   : > { %v276_v3 = vmul.f32 0.03125, %v274_v2 }
  0xfb   : > { %v277_v4 = vsub.f32 %v270_v0, %v276_v3 }
  0xfd   : > { %v278_v5 = vmul.f32 %v277_v4, %v277_v4 }
  0xff   : > { %v279_v6 = vsel %vm271_vm0, %v278_v5, 0.0 }
 0x100   : > { %280 = vadd.xlane.f32.xlu0 %v279_v6 }
 0x18d   : > { %v281_v10 = vpop.xlane.xlu0 %280 }
 0x18e   : > { %v282_v11 = vmul.f32 0.03125, %v281_v10 }
 0x190   : > { %v283_v12 = vadd.f32 1e-05, %v282_v11 }
 0x192   : > { %1192 = vrsqrt.f32 %v283_v12 }
 0x19c   : > { %v1193_v13 = vpop.eup %1192 }
 0x19d   : > { %v285_v15 = vmul.f32 %v1193_v13, %v277_v4 }
 0x19f   : > { %v293_v17 = vmul.f32 %v997_v14, %v285_v15 }
 0x1a1   : > { %v301_v18 = vadd.f32 %v998_v16, %v293_v17 }
 0x1a3   : > { %v302_v19 = vpack.c.bf16 %v301_v18, %v301_v18 }
 0x1a5   : > { %1044 = vmatmul.mubr.msk.bf16.vlgmr.msra.gmra.mrb[0].mxu0 %vm271_vm0, %v302_v19 }
 0x1a6   : > { %1055 = vmatprep.mubr.msk.bf16.mxu0 %vm1374_vm1, %v1373_v8 }
 0x278   : > { %v356_v20 = vpop.f32.mrb[0].mxu0 }
 0x279   : > { %v1622_v21 = vpack.c.bf16 %v356_v20, %v356_v20  ;;  %v1045_v22 = vpop.f32.mrb[1].mxu0 }
 0x27a   : > { %v359_v23 = vpop.f32.mrb[2].mxu0 }
 0x27b   : > { %474 = vrot.lane.b32.xlu0 %v1622_v21, %s1375_s11  ;;  %364 = vrot.lane.b32.xlu1 %v1622_v21, %s1376_s28  ;;  %v1046_v24 = vpop.f32.mrb[3].mxu0  ;;  %s1014_s11 = sshll.u32 %s1441_s22, 7  ;;  %s268_s28 = scalar_lea.vmem [#allocation8], %s993_s13 }
 0x27c   : > { %s1389_s13 = smov [#allocation8]  }
 0x27f   : > { %476 = vrot.lane.b32.xlu1 %v1622_v21, %s1377_s7  ;;  %s896_s7 = sshll.u32 %s268_s28, 4  ;;  %s1692_s7 = int_to_ptr.vmem [resolvable:$true] %s896_s7 }
 0x280   : > { %s1296_s22 = scalar_lea.vmem %s1692_s7, 128 }
 0x281   : > { %p1297_p11 = scmp.ne.s32.totalorder %s1692_s7, %s1296_s22 }
 0x283   : > { %586 = vrot.lane.b32.xlu1 %v1622_v21, %s1378_s6  ;;  %p1298_p1 = pnand %p1297_p11, %p1754_p0 }
 0x285   : > { %p1299_p3 = pneg %p1298_p1 }
 0x287   : > { %584 = vrot.lane.b32.xlu1 %v1622_v21, %s1379_s30 }
 0x28b   : > { %696 = vrot.lane.b32.xlu1 %v1622_v21, %s1380_s15  ;;  %s1690_s15 = scalar_lea.hbm %s1740_s5, %s1014_s11 }
 0x28f   : > { %694 = vrot.lane.b32.xlu1 %v1622_v21, %s1381_s16  ;;  %s883_s16 = scalar_lea.sflag [#allocation4], %s1589_s12 }
 0x2ed   : > { %v365_v25 = vpop.permute.xlu1 %364  ;;  %v475_v30 = vpop.permute.xlu0 %474 }
 0x2ee   : > { %v371_v26 = vsel %vm366_vm2, %v365_v25, 0 }
 0x2ef   : > { %1048 = vmatpush3.bf16.xpose.msra.mxu1 %v371_v26 }
 0x2f0   : > { %1059 = vmatprep.subr.bf16.mxu1 %v1373_v8 }
 0x2f1   : > { %v477_v27 = vpop.permute.xlu1 %476 }
 0x2f2   : > { %v482_v28 = vsel %vm366_vm2, %v477_v27, 0 }
 0x2f5   : > { %v587_v29 = vpop.permute.xlu1 %586 }
 0x2f6   : > { %1050 = vmatmul.mubr.msk.bf16.vlgmr.msra.gmra.mrb[0].mxu1 %vm366_vm2, %v1622_v21  ;;  %v592_v32 = vsel %vm366_vm2, %v587_v29, 0 }
 0x2f7   : > { %1060 = vmatpush3.bf16.xpose.msra.mxu1 %v482_v28  ;;  %1061 = vmatprep.mubr.msk.bf16.mxu1 %vm1374_vm1, %v1373_v8 }
 0x2f8   : > { %1071 = vmatprep.subr.bf16.mxu1 %v1373_v8 }
 0x2f9   : > { %v585_v31 = vpop.permute.xlu1 %584 }
 0x2fd   : > { %v697_v33 = vpop.permute.xlu1 %696 }
 0x2fe   : > { %1062 = vmatmul.mubr.msk.bf16.vlgmr.msra.gmra.mrb[4].mxu1 %vm366_vm2, %v475_v30  ;;  %v702_v34 = vsel %vm366_vm2, %v697_v33, 0 }
 0x2ff   : > { %1072 = vmatpush3.bf16.xpose.msra.mxu1 %v592_v32  ;;  %1073 = vmatprep.mubr.msk.bf16.mxu1 %vm1374_vm1, %v1373_v8 }
 0x300   : > { %1083 = vmatprep.subr.bf16.mxu1 %v1373_v8 }
 0x301   : > { %v695_v35 = vpop.permute.xlu1 %694 }
 0x306   : > { %1074 = vmatmul.mubr.msk.bf16.vlgmr.msra.gmra.mrb[8].mxu1 %vm366_vm2, %v585_v31 }
 0x307   : > { %1084 = vmatpush3.bf16.xpose.msra.mxu1 %v702_v34  ;;  %1085 = vmatprep.mubr.msk.bf16.mxu1 %vm1374_vm1, %v1373_v8 }
 0x308   : > { %1095 = vmatprep.subr.bf16.mxu1 %v1373_v8 }
 0x30e   : > { %1086 = vmatmul.mubr.msk.bf16.vlgmr.msra.gmra.mrb[12].mxu1 %vm366_vm2, %v695_v35 }
 0x30f   : > { %1099 = vmatprep.mubr.msk.bf16.mxu1 %vm1374_vm1, %v1373_v8 }
 0x3c9   : > { %v407_v36 = vpop.f32.mrb[0].mxu1 }
 0x3ca   : > { %v1051_v37 = vpop.f32.mrb[1].mxu1  ;;  %v413_v38 = vsel %vm366_vm2, %v407_v36, -inf }
 0x3cb   : > { %414 = vmax.xlane.f32.xlu1 %v413_v38  ;;  %v410_v39 = vpop.f32.mrb[2].mxu1 }
 0x3cc   : > { %v1052_v40 = vpop.f32.mrb[3].mxu1 }
 0x3d1   : > { %v518_v41 = vpop.f32.mrb[4].mxu1 }
 0x3d2   : > { %v1063_v42 = vpop.f32.mrb[5].mxu1  ;;  %v524_v43 = vsel %vm366_vm2, %v518_v41, -inf }
 0x3d3   : > { %525 = vmax.xlane.f32.xlu0 %v524_v43  ;;  %v521_v44 = vpop.f32.mrb[6].mxu1 }
 0x3d4   : > { %v1064_v45 = vpop.f32.mrb[7].mxu1 }
 0x3d5   : > { %v1190_v45 = vld [vmem:[#allocation7] sm:$0xff]  }
 0x3d6   : > { %1096 = vmatpush3.bf16.msra.mxu1 %v1190_v45 }
 0x3d7   : > { %1097 = vmatprep.subr.bf16.mxu1 %v1373_v8 }
 0x3d9   : > { %v628_v46 = vpop.f32.mrb[8].mxu1 }
 0x3da   : > { %v1075_v47 = vpop.f32.mrb[9].mxu1  ;;  %v634_v48 = vsel %vm366_vm2, %v628_v46, -inf }
 0x3db   : > { %635 = vmax.xlane.f32.xlu1 %v634_v48  ;;  %v631_v49 = vpop.f32.mrb[10].mxu1 }
 0x3dc   : > { %v1076_v50 = vpop.f32.mrb[11].mxu1 }
 0x3e1   : > { %v738_v51 = vpop.f32.mrb[12].mxu1 }
 0x3e2   : > { %v1087_v52 = vpop.f32.mrb[13].mxu1  ;;  %v744_v53 = vsel %vm366_vm2, %v738_v51, -inf }
 0x3e3   : > { %745 = vmax.xlane.f32.xlu0 %v744_v53  ;;  %v741_v54 = vpop.f32.mrb[14].mxu1 }
 0x3e4   : > { %v1088_v55 = vpop.f32.mrb[15].mxu1 }
 0x458   : > { %v415_v56 = vpop.xlane.xlu1 %414 }
 0x459   : > { %v416_v57 = vsub.f32 %v407_v36, %v415_v56 }
 0x45b   : > { %v417_v58 = vmul.f32 1.442695, %v416_v57 }
 0x45d   : > { %1194 = vpow2.f32 %v417_v58 }
 0x460   : > { %v526_v59 = vpop.xlane.xlu0 %525 }
 0x461   : > { %v527_v60 = vsub.f32 %v518_v41, %v526_v59 }
 0x463   : > { %v528_v61 = vmul.f32 1.442695, %v527_v60 }
 0x465   : > { %1196 = vpow2.f32 %v528_v61 }
 0x467   : > { %v1195_v62 = vpop.eup %1194 }
 0x468   : > { %v419_v63 = vsel %vm366_vm2, %v1195_v62, 0.0  ;;  %v636_v7 = vpop.xlane.xlu1 %635 }
 0x469   : > { %420 = vadd.xlane.f32.xlu1 %v419_v63  ;;  %v637_v9 = vsub.f32 %v628_v46, %v636_v7  ;;  %v1191_v46 = vld [vmem:[#allocation7 + $0x8] sm:$0xff]  }
 0x46a   : > { %1098 = vmatpush3.bf16.msra.mxu1 %v1191_v46 }
 0x46b   : > { %v638_v10 = vmul.f32 1.442695, %v637_v9 }
 0x46f   : > { %v1197_v0 = vpop.eup %1196 }
 0x470   : > { %v746_v1 = vpop.xlane.xlu0 %745  ;;  %v530_v2 = vsel %vm366_vm2, %v1197_v0, 0.0 }
 0x471   : > { %v747_v3 = vsub.f32 %v738_v51, %v746_v1  ;;  %531 = vadd.xlane.f32.xlu0 %v530_v2 }
 0x473   : > { %v748_v4 = vmul.f32 1.442695, %v747_v3 }
 0x475   : > { %1198 = vpow2.f32 %v748_v4 }
 0x476   : > { %1200 = vpow2.f32 %v638_v10 }
 0x47a   : > { %425 = vrot.lane.b32.xlu1 %v1622_v21, %s1382_s9  ;;  %s1300_s9 = sshll.u32 %s1389_s13, 4  ;;  %s1301_s9 = int_to_ptr.vmem [resolvable:$false] %s1300_s9 }
 0x47b   : > { %p1303_p7 = scmp.lt.s32.totalorder %s1692_s7, %s1301_s9 }
 0x47f   : > { %v1199_v5 = vpop.eup %1198 }
 0x480   : > { %v750_v6 = vsel %vm366_vm2, %v1199_v5, 0.0  ;;  %v1201_v11 = vpop.eup %1200 }
 0x481   : > { %751 = vadd.xlane.f32.xlu0 %v750_v6  ;;  %v640_v12 = vsel %vm366_vm2, %v1201_v11, 0.0 }
 0x497   : > { %536 = vrot.lane.b32.xlu0 %v1622_v21, %s1383_s29  ;;  %s1302_s29 = scalar_lea.vmem %s1301_s9, 256 }
 0x498   : > { %p1304_p9 = scmp.lt.s32.totalorder %s1302_s29, %s1296_s22 }
 0x49a   : > { %p1305_p12 = por %p1304_p9, %p1303_p7 }
 0x49c   : > { %p1306_p2 = pnand %p1305_p12, %p1299_p3 }
 0x49e   : > { %641 = vadd.xlane.f32.xlu1 %v640_v12 }
 0x4af   : > { %646 = vrot.lane.b32.xlu1 %v1622_v21, %s1384_s17 }
 0x4b3   : > { %756 = vrot.lane.b32.xlu1 %v1622_v21, %s1385_s24 }
 0x4f6   : > { %v421_v13 = vpop.xlane.xlu1 %420 }
 0x4f7   : > { %1202 = vrcp.f32 %v421_v13 }
 0x4fa   : > { %v426_v14 = vpop.permute.xlu1 %425 }
 0x4fb   : > { %v432_v15 = vsel %vm430_vm3, %v426_v14, 0 }
 0x4fc   : > { %1054 = vmatpush3.bf16.msra.mxu0 %v432_v15 }
 0x4fd   : > { %1065 = vmatprep.subr.bf16.mxu0 %v1373_v8 }
 0x4fe   : > { %v532_v17 = vpop.xlane.xlu0 %531 }
 0x4ff   : > { %1204 = vrcp.f32 %v532_v17 }
 0x501   : > { %v1203_v16 = vpop.eup %1202 }
 0x502   : > { %v423_v18 = vmul.f32 %v1203_v16, %v1195_v62 }
 0x504   : > { %v424_v19 = vpack.c.bf16 %v423_v18, %v423_v18 }
 0x506   : > { %1056 = vmatmul.mubr.msk.bf16.vlgmr.msra.gmra.mrb[4].mxu0 %vm366_vm2, %v424_v19 }
 0x507   : > { %1067 = vmatprep.mubr.msk.bf16.mxu0 %vm1374_vm1, %v1373_v8 }
 0x509   : > { %v1205_v20 = vpop.eup %1204 }
 0x50a   : > { %v534_v22 = vmul.f32 %v1205_v20, %v1197_v0 }
 0x50c   : > { %v535_v25 = vpack.c.bf16 %v534_v22, %v534_v22 }
 0x50e   : > { %v752_v21 = vpop.xlane.xlu0 %751 }
 0x512   : > { %v537_v23 = vpop.permute.xlu0 %536 }
 0x513   : > { %v542_v24 = vsel %vm430_vm3, %v537_v23, 0 }
 0x514   : > { %1066 = vmatpush3.bf16.msra.mxu0 %v542_v24 }
 0x515   : > { %1077 = vmatprep.subr.bf16.mxu0 %v1373_v8 }
 0x517   : > { %1068 = vmatmul.mubr.msk.bf16.vlgmr.msra.gmra.mrb[8].mxu0 %vm366_vm2, %v535_v25 }
 0x518   : > { %1079 = vmatprep.mubr.msk.bf16.mxu0 %vm1374_vm1, %v1373_v8 }
 0x52b   : > { %v642_v26 = vpop.xlane.xlu1 %641 }
 0x52c   : > { %1206 = vrcp.f32 %v642_v26 }
 0x52d   : > { %1208 = vrcp.f32 %v752_v21 }
 0x52f   : > { %v647_v27 = vpop.permute.xlu1 %646 }
 0x530   : > { %v652_v28 = vsel %vm430_vm3, %v647_v27, 0 }
 0x531   : > { %1078 = vmatpush3.bf16.msra.mxu0 %v652_v28 }
 0x532   : > { %1089 = vmatprep.subr.bf16.mxu0 %v1373_v8 }
 0x533   : > { %v757_v31 = vpop.permute.xlu1 %756 }
 0x534   : > { %v762_v34 = vsel %vm430_vm3, %v757_v31, 0 }
 0x536   : > { %v1207_v29 = vpop.eup %1206 }
 0x537   : > { %v644_v30 = vmul.f32 %v1207_v29, %v1201_v11  ;;  %v1209_v33 = vpop.eup %1208 }
 0x538   : > { %v754_v35 = vmul.f32 %v1209_v33, %v1199_v5 }
 0x539   : > { %v645_v32 = vpack.c.bf16 %v644_v30, %v644_v30 }
 0x53a   : > { %v755_v36 = vpack.c.bf16 %v754_v35, %v754_v35 }
 0x53b   : > { %1080 = vmatmul.mubr.msk.bf16.vlgmr.msra.gmra.mrb[12].mxu0 %vm366_vm2, %v645_v32 }
 0x53c   : > { %1090 = vmatpush3.bf16.msra.mxu0 %v762_v34  ;;  %1091 = vmatprep.mubr.msk.bf16.mxu0 %vm1374_vm1, %v1373_v8 }
 0x543   : > { %1092 = vmatmul.mubr.msk.bf16.vlgmr.msra.gmra.mrb[16].mxu0 %vm366_vm2, %v755_v36 }
 0x5d9   : > { %v468_v37 = vpop.f32.mrb[4].mxu0 }
 0x5da   : > { %v1057_v38 = vpop.f32.mrb[5].mxu0 }
 0x5db   : > { %v471_v39 = vpop.f32.mrb[6].mxu0 }
 0x5dc   : > { %v1058_v40 = vpop.f32.mrb[7].mxu0 }
 0x5ea   : > { %v578_v41 = vpop.f32.mrb[8].mxu0 }
 0x5eb   : > { %805 = vrot.lane.b32.xlu0 %v578_v41, %s1386_s26  ;;  %v1069_v42 = vpop.f32.mrb[9].mxu0 }
 0x5ec   : > { %v581_v43 = vpop.f32.mrb[10].mxu0 }
 0x5ed   : > { %v1070_v44 = vpop.f32.mrb[11].mxu0 }
 0x60e   : > { %v688_v47 = vpop.f32.mrb[12].mxu0 }
 0x60f   : > { %809 = vrot.lane.b32.xlu1 %v688_v47, %s1387_s8  ;;  %v1081_v48 = vpop.f32.mrb[13].mxu0 }
 0x610   : > { %v691_v49 = vpop.f32.mrb[14].mxu0 }
 0x611   : > { %v1082_v50 = vpop.f32.mrb[15].mxu0 }
 0x616   : > { %v798_v51 = vpop.f32.mrb[16].mxu0 }
 0x617   : > { %813 = vrot.lane.b32.xlu0 %v798_v51, %s1388_s10  ;;  %v1093_v52 = vpop.f32.mrb[17].mxu0 }
 0x618   : > { %v801_v53 = vpop.f32.mrb[18].mxu0 }
 0x619   : > { %v1094_v54 = vpop.f32.mrb[19].mxu0 }
 0x65d   : > { %v806_v55 = vpop.permute.xlu0 %805 }
 0x65e   : > { %v816_v8 = vsel %vm366_vm2, %v468_v37, %v806_v55 }
 0x681   : > { %v810_v56 = vpop.permute.xlu1 %809 }
 0x682   : > { %v818_v57 = vsel %vm817_vm4, %v816_v8, %v810_v56 }
 0x689   : > { %v814_v58 = vpop.permute.xlu0 %813 }
 0x68a   : > { %v820_v59 = vsel %vm819_vm5, %v818_v57, %v814_v58 }
 0x68b   : > { %v821_v60 = vpack.c.bf16 %v820_v59, %v820_v59 }
 0x68d   : > { %1100 = vmatmul.mubr.msk.bf16.vlgmr.msra.gmra.mrb[16].mxu1 %vm271_vm0, %v821_v60 }
 0x760   : > { %v875_v61 = vpop.f32.mrb[16].mxu1 }
 0x761   : > { %881 = vst.msk [vmem:[%s268_s28] sm:$0xff] %vm271_vm0, %v875_v61  ;;  %v1101_v62 = vpop.f32.mrb[17].mxu1 }
 0x762   : > { %v878_v63 = vpop.f32.mrb[18].mxu1 }
 0x763   : > { %1309 = shalt.err (!%p1306_p2)
}
 0x764   : > { %s1310_s12 = scalar_lea.hbm %s1690_s15, 128  ;;  %s1314_s26 = scalar_lea.hbm %s1740_s5, 256 }
 0x765   : > { %p1311_p13 = scmp.ne.s32.totalorder %s1690_s15, %s1310_s12  ;;  %p1315_p4 = scmp.lt.u32.totalorder %s1690_s15, %s1740_s5 }
 0x766   : > { %p1316_p5 = scmp.lt.u32.totalorder %s1314_s26, %s1310_s12  ;;  %p1318_p11 = scmp.lt.u32.totalorder %s1310_s12, %s1690_s15 }
 0x767   : > { %p1312_p6 = pnand %p1311_p13, %p1754_p0 }
 0x768   : > { %p1317_p8 = por %p1316_p5, %p1315_p4 }
 0x769   : > { %p1313_p10 = pneg %p1312_p6 }
 0x76a   : > { %p1319_p1 = por %p1318_p11, %p1317_p8 }
 0x76c   : > { %p1320_p3 = pnand %p1319_p1, %p1313_p10 }
 0x76e   : > { %1323 = shalt.err (!%p1320_p3)
}
 0x76f   : > { %1113 = dma.vmem_to_hbm [thread:$0]  (%p1754_p0), %s1692_s7, 128, %s1690_s15, %s883_s16   ;;  %v1102_v0 = vpop.f32.mrb[19].mxu1 }
 0x770 PF: > { %s908_s11 = sand.u32 1, %s1354_s18   ;;  %p1755_p7 = scmp.ne.s32.totalorder %s1745_s25, 0 }
 0x771   : > { %p1756_p9 = scmp.ge.s32.totalorder %s1366_s21, 2  ;;  %s909_s28 = scalar_lea.sflag [#allocation4], %s908_s11 }
 0x773   : > { %p1127_p12 = pnand %p1756_p9, %p1755_p7 }
 0x775   : > { %1349 = dma.done.wait (!%p1127_p12), %s909_s28, 128  }
 0x776   : > { %1351 = vsyncadd (!%p1127_p12), %s909_s28, 4294967168  ;;  %p19_p2 = scmp.ge.s32.totalorder %s1530_s14, 4   ;;  %s1757_s18 = smov %s1358_s19 }
 0x777   : > { %s1758_s19 = smov %s1362_s20  ;;  %s1759_s20 = smov %s1546_s27 }
 0x778   : > { %s1760_s21 = smov %s1530_s14  ;;  %21 = sbr.rel (!%p19_p2) target bundleno = 6 (0x6), region = 93 }
 0x77f   :  { %914 = vsyncpa [#allocation3], 1 }
 0x780   :  { %916 = vsyncpa [#allocation3 + $0x1], 1 }
 0x781   :  { %917 = vsyncpa [#allocation6], 1 }
 0x782   :  { %918 = vsyncpa [#allocation4], 1 }
 0x783   :  { %920 = vsyncpa [#allocation4 + $0x1], 1 }

</bundles_post_ra>
